<compile_context>
chip_gen: v7x
topology: tpu7x:2x2x1
jax: 0.10.0
libtpu: 0.0.40
codegen_flags: <defaults>
</compile_context>

<pallas_src>
import functools

import jax
import jax.numpy as jnp
from jax.experimental import pallas as pl
from jax.experimental.pallas import tpu as pltpu

LANES = 128
SUBLANES = 8
MAX_ROW_TILE = 4096      # 4096 x 128 x 4B = 2 MiB per f32 input block
MIN_EVEN_TILE = 512      # smallest "even divisor" tile we accept before
                         # falling back to a masked ragged last block


def _smape_mean_kernel(im_ref, ref_ref, out_ref, acc_ref, *,
                       eps, inv_n, row_tile, valid_rows, needs_mask):
    # Zero the single-vreg accumulator on the first grid step.
    @pl.when(pl.program_id(0) == 0)
    def _():
        acc_ref[...] = jnp.zeros_like(acc_ref)

    x = im_ref[...].astype(jnp.float32)
    y = ref_ref[...].astype(jnp.float32)

    ratio = jnp.abs(x - y) / (eps + jnp.abs(x) + jnp.abs(y))

    if needs_mask:
        # Ragged last block: rows past `valid_rows` hold unspecified data.
        # A single select on the ratio zeroes their contribution (select does
        # not propagate NaN/Inf from the unselected branch).
        row0 = pl.program_id(0) * row_tile
        local_row = jax.lax.broadcasted_iota(jnp.int32, ratio.shape, 0)
        valid = (row0 + local_row) < valid_rows
        ratio = jnp.where(valid, ratio, 0.0)

    # Fold rows into a single-vreg (8, 128) partial sum: pure VPU adds per
    # step; the one cross-lane/sublane reduce happens once at the end.
    acc_ref[...] += ratio.reshape(row_tile // SUBLANES, SUBLANES, LANES).sum(axis=0)

    # Final full reduce + mean scaling + store on the last grid step.
    @pl.when(pl.program_id(0) == pl.num_programs(0) - 1)
    def _():
        out_ref[...] = jnp.sum(acc_ref[...], keepdims=True) * inv_n


def _pick_row_tile(rows):
    """Return (row_tile, needs_mask).  rows is a multiple of SUBLANES."""
    if rows <= MAX_ROW_TILE:
        return rows, False
    # Largest multiple-of-8 divisor of rows that fits in MAX_ROW_TILE:
    # every block is full -> no in-kernel mask.
    for t in range(MAX_ROW_TILE, MIN_EVEN_TILE - 1, -SUBLANES):
        if rows % t == 0:
            return t, False
    # No reasonable even divisor: use full-size tiles + mask the last block.
    return MAX_ROW_TILE, True


def smape(im, ref, eps=0.01):
    """Pallas TPU implementation of SMAPE loss (scalar mean)."""
    assert im.shape == ref.shape, "im and ref must have the same shape"
    assert eps > 0, "eps must be > 0 (padding / masking relies on it)"
    n_elems = im.size

    # Keep native dtype; cast to f32 happens inside the kernel.
    flat_im = jnp.ravel(im)
    flat_ref = jnp.ravel(ref)

    # Pad (full XLA copy) ONLY when the flat length is not already a multiple
    # of one (8, 128) vreg.  Padded elements contribute 0 to the sum.
    vreg_elems = SUBLANES * LANES
    rem = n_elems % vreg_elems
    if rem:
        pad = vreg_elems - rem
        flat_im = jnp.pad(flat_im, (0, pad))
        flat_ref = jnp.pad(flat_ref, (0, pad))

    rows = flat_im.size // LANES          # guaranteed multiple of 8
    slab_im = flat_im.reshape(rows, LANES)
    slab_ref = flat_ref.reshape(rows, LANES)

    row_tile, needs_mask = _pick_row_tile(rows)
    grid = (pl.cdiv(rows, row_tile),)

    kernel = functools.partial(
        _smape_mean_kernel, eps=float(eps), inv_n=float(1.0 / n_elems),
        row_tile=row_tile, valid_rows=rows, needs_mask=needs_mask)

    mean = pl.pallas_call(
        kernel,
        out_shape=jax.ShapeDtypeStruct((1, 1), jnp.float32),
        grid_spec=pltpu.PrefetchScalarGridSpec(
            num_scalar_prefetch=0,
            grid=grid,
            in_specs=[
                pl.BlockSpec((row_tile, LANES), lambda i: (i, 0)),
                pl.BlockSpec((row_tile, LANES), lambda i: (i, 0)),
            ],
            out_specs=pl.BlockSpec((1, 1), lambda i: (0, 0)),
            scratch_shapes=[pltpu.VMEM((SUBLANES, LANES), jnp.float32)],
        ),
        compiler_params=pltpu.CompilerParams(
            dimension_semantics=("arbitrary",),
        ),
    )(slab_im, slab_ref)

    return mean[0, 0]


def smape_reference(im, ref, eps=0.01):
    """Pure-JAX reference matching the PyTorch forward (f32 math)."""
    x = im.astype(jnp.float32)
    y = ref.astype(jnp.float32)
    return jnp.mean(jnp.abs(x - y) / (eps + jnp.abs(x) + jnp.abs(y)))


if __name__ == "__main__":
    key = jax.random.PRNGKey(0)
    k1, k2, k3, k4, k5, k6, k7, k8 = jax.random.split(key, 8)

    # Primary case: small NCHW image batch (consistent with the module).
    im = jax.random.normal(k1, (2, 4, 16, 16), dtype=jnp.float32)
    ref = jax.random.normal(k2, (2, 4, 16, 16), dtype=jnp.float32)
    out = jax.block_until_ready(smape(im, ref))
    expected = smape_reference(im, ref)
    assert jnp.allclose(out, expected, rtol=1e-5, atol=1e-6), (out, expected)

    # Ragged case: element count not a multiple of 1024 (exercises pad path).
    im2 = jax.random.normal(k3, (3, 5, 7, 11), dtype=jnp.float32)
    ref2 = jax.random.normal(k4, (3, 5, 7, 11), dtype=jnp.float32)
    out2 = jax.block_until_ready(smape(im2, ref2))
    exp2 = smape_reference(im2, ref2)
    assert jnp.allclose(out2, exp2, rtol=1e-5, atol=1e-6), (out2, exp2)

    # Multi-step case: rows > MAX_ROW_TILE (exercises the even-divisor tile
    # pick: 640*1000 elems -> 5000 rows -> row_tile 1000, no mask).
    im3 = jax.random.normal(k5, (1, 1, 640, 1000), dtype=jnp.float32)
    ref3 = jax.random.normal(k6, (1, 1, 640, 1000), dtype=jnp.float32)
    out3 = jax.block_until_ready(smape(im3, ref3))
    exp3 = smape_reference(im3, ref3)
    assert jnp.allclose(out3, exp3, rtol=1e-5, atol=1e-6), (out3, exp3)

    # Native bf16 inputs (exercises the in-kernel cast / half-HBM path).
    im4 = jax.random.normal(k7, (2, 4, 16, 16), dtype=jnp.bfloat16)
    ref4 = jax.random.normal(k8, (2, 4, 16, 16), dtype=jnp.bfloat16)
    out4 = jax.block_until_ready(smape(im4, ref4))
    exp4 = smape_reference(im4, ref4)
    assert jnp.allclose(out4, exp4, rtol=1e-5, atol=1e-6), (out4, exp4)

    print("KERNEL_OK")
</pallas_src>

<mosaic_0001>
module attributes {stable_mosaic.version = 11 : i64} {
  func.func @_smape_mean_kernel(%arg0: i32, %arg1: memref<16x128xf32, #tpu.memory_space<vmem>>, %arg2: memref<16x128xf32, #tpu.memory_space<vmem>>, %arg3: memref<1x1xf32, #tpu.memory_space<vmem>>, %arg4: memref<8x128xf32, #tpu.memory_space<vmem>>) attributes {dimension_semantics = [#tpu.dimension_semantics<arbitrary>], iteration_bounds = array<i64: 1>, scalar_prefetch = 0 : i64, scratch_operands = 1 : i64, tpu.core_type = #tpu.core_type<tc>, window_params = [{transform_indices = @transform_0, window_bounds = array<i64: 16, 128>}, {transform_indices = @transform_1, window_bounds = array<i64: 16, 128>}, {pipeline_mode = #tpu.pipeline_mode<synchronous>, transform_indices = @transform_2, window_bounds = array<i64: 1, 1>}]} {
    %c0_i32 = arith.constant 0 : i32
    %0 = arith.cmpi eq, %arg0, %c0_i32 : i32
    %1 = arith.extui %0 : i1 to i32
    %c0_i32_0 = arith.constant 0 : i32
    %2 = arith.cmpi ne, %1, %c0_i32_0 : i32
    scf.if %2 {
      %cst_11 = arith.constant 0.000000e+00 : f32
      %21 = vector.broadcast %cst_11 : f32 to vector<8x128xf32>
      %c0_12 = arith.constant 0 : index
      %c0_13 = arith.constant 0 : index
      %22 = vector.load %arg4[%c0_12, %c0_13] : memref<8x128xf32, #tpu.memory_space<vmem>>, vector<8x128xf32>
      tpu.vector_store %arg4[%c0_12, %c0_13], %21 {strides = array<i32>} : memref<8x128xf32, #tpu.memory_space<vmem>>, vector<8x128xf32>,
    } else {
    }
    %c0 = arith.constant 0 : index
    %c0_1 = arith.constant 0 : index
    %3 = vector.load %arg1[%c0, %c0_1] : memref<16x128xf32, #tpu.memory_space<vmem>>, vector<16x128xf32>
    %c0_2 = arith.constant 0 : index
    %c0_3 = arith.constant 0 : index
    %4 = vector.load %arg2[%c0_2, %c0_3] : memref<16x128xf32, #tpu.memory_space<vmem>>, vector<16x128xf32>
    %5 = arith.subf %3, %4 : vector<16x128xf32>
    %6 = math.absf %5 : vector<16x128xf32>
    %7 = math.absf %3 : vector<16x128xf32>
    %cst = arith.constant 0.00999999977 : f32
    %8 = vector.broadcast %cst : f32 to vector<16x128xf32>
    %9 = arith.addf %8, %7 : vector<16x128xf32>
    %10 = math.absf %4 : vector<16x128xf32>
    %11 = arith.addf %9, %10 : vector<16x128xf32>
    %12 = arith.divf %6, %11 : vector<16x128xf32>
    %c0_4 = arith.constant 0 : index
    %c0_5 = arith.constant 0 : index
    %13 = vector.load %arg4[%c0_4, %c0_5] : memref<8x128xf32, #tpu.memory_space<vmem>>, vector<8x128xf32>
    %14 = vector.shape_cast %12 : vector<16x128xf32> to vector<2x8x128xf32>
    %cst_6 = arith.constant dense<0.000000e+00> : vector<8x128xf32>
    %15 = vector.multi_reduction <add>, %14, %cst_6 [0] : vector<2x8x128xf32> to vector<8x128xf32>
    %16 = arith.addf %13, %15 : vector<8x128xf32>
    %c0_7 = arith.constant 0 : index
    %c0_8 = arith.constant 0 : index
    %17 = vector.load %arg4[%c0_7, %c0_8] : memref<8x128xf32, #tpu.memory_space<vmem>>, vector<8x128xf32>
    tpu.vector_store %arg4[%c0_7, %c0_8], %16 {strides = array<i32>} : memref<8x128xf32, #tpu.memory_space<vmem>>, vector<8x128xf32>,
    %c0_i32_9 = arith.constant 0 : i32
    %18 = arith.cmpi eq, %arg0, %c0_i32_9 : i32
    %19 = arith.extui %18 : i1 to i32
    %c0_i32_10 = arith.constant 0 : i32
    %20 = arith.cmpi ne, %19, %c0_i32_10 : i32
    scf.if %20 {
      %c0_11 = arith.constant 0 : index
      %c0_12 = arith.constant 0 : index
      %21 = vector.load %arg4[%c0_11, %c0_12] : memref<8x128xf32, #tpu.memory_space<vmem>>, vector<8x128xf32>
      %22 = vector.shape_cast %21 : vector<8x128xf32> to vector<1x8x128xf32>
      %cst_13 = arith.constant dense<0.000000e+00> : vector<1xf32>
      %23 = vector.multi_reduction <add>, %22, %cst_13 [1, 2] : vector<1x8x128xf32> to vector<1xf32>
      %24 = vector.shape_cast %23 : vector<1xf32> to vector<1x1x1xf32>
      %25 = vector.extract %24[0, 0, 0] : f32 from vector<1x1x1xf32>
      %26 = vector.broadcast %25 : f32 to vector<1x1xf32>
      %cst_14 = arith.constant 4.8828125E-4 : f32
      %27 = vector.broadcast %cst_14 : f32 to vector<1x1xf32>
      %28 = arith.mulf %26, %27 : vector<1x1xf32>
      %c0_15 = arith.constant 0 : index
      %c0_16 = arith.constant 0 : index
      %29 = vector.load %arg3[%c0_15, %c0_16] : memref<1x1xf32, #tpu.memory_space<vmem>>, vector<1x1xf32>
      tpu.vector_store %arg3[%c0_15, %c0_16], %28 {strides = array<i32>} : memref<1x1xf32, #tpu.memory_space<vmem>>, vector<1x1xf32>,
    } else {
    }
    return
  }
  func.func @transform_0(%arg0: i32) -> (i32, i32) {
    %c0_i32 = arith.constant 0 : i32
    %c0_i32_0 = arith.constant 0 : i32
    return %arg0, %c0_i32 : i32, i32
  }
  func.func @transform_1(%arg0: i32) -> (i32, i32) {
    %c0_i32 = arith.constant 0 : i32
    %c0_i32_0 = arith.constant 0 : i32
    return %arg0, %c0_i32 : i32, i32
  }
  func.func @transform_2(%arg0: i32) -> (i32, i32) {
    %c0_i32 = arith.constant 0 : i32
    %c0_i32_0 = arith.constant 0 : i32
    %c0_i32_1 = arith.constant 0 : i32
    return %c0_i32, %c0_i32_0 : i32, i32
  }
}

</mosaic_0001>

<bundles_post_ra>
// kernel: tpu_custom_call.1
= control target key start
LH: loop header
LB: loop body
LE: loop exit
PB: predicated region body
PF: predicated region fallthrough
CT: control target
= control target key end

     0   :  { %7 = vsyncpa [#allocation4], 0  ;;  %s241_s0 = inlined_call_operand.hbm [shape: f32[16,128], index: 0, kind: input, shape index: {}]   ;;  %s242_s1 = inlined_call_operand.hbm [shape: f32[16,128], index: 1, kind: input, shape index: {}]   ;;  %s243_s2 = inlined_call_operand.hbm [shape: f32[1,1], index: 2, kind: output, shape index: {}]  }
   0x1   :  { %8 = vsyncpa [#allocation7], 0 }
   0x2   :  { %9 = vsyncpa [#allocation5], 0  ;;  %s185_s9 = smov [#allocation3]   ;;  %s113_s13 = scalar_lea.hbm %s241_s0, 256 }
   0x3   :  { %s15_s10 = sshll.u32 %s185_s9, 4  ;;  %p114_p0 = scmp.ne.s32.totalorder %s241_s0, %s113_s13  ;;  %s16_s10 = int_to_ptr.vmem [resolvable:$true] %s15_s10 }
   0x4   :  { %p117_p1 = scmp.lt.u32.totalorder %s113_s13, %s241_s0 }
   0x6   :  { %p119_p2 = pnand %p117_p1, %p114_p0 }
   0x8   :  { %122 = shalt.err (!%p119_p2)
}
   0x9   :  { %s123_s18 = scalar_lea.vmem %s16_s10, 256  ;;  %p128_p4 = scmp.lt.s32.totalorder %s16_s10, %s16_s10 }
   0xa   :  { %p124_p3 = scmp.ne.s32.totalorder %s16_s10, %s123_s18  ;;  %p129_p5 = scmp.lt.s32.totalorder %s123_s18, %s123_s18 }
   0xc   :  { %p130_p6 = por %p129_p5, %p128_p4 }
   0xe   :  { %p131_p7 = pnand %p130_p6, %p124_p3 }
  0x10   :  { %134 = shalt.err (!%p131_p7)
}
  0x11   :  { %s186_s19 = smov 128   ;;  %s187_s20 = smov 8  }
  0x12   :  { %21 = dma.hbm_to_vmem [thread:$0]  %s241_s0, 256, %s16_s10, [#allocation4], %s186_s19, %s186_s19, %s187_s20  }
  0x13   :  { %s188_s23 = smov [#allocation6]   ;;  %s135_s27 = scalar_lea.hbm %s242_s1, 256 }
  0x14   :  { %s27_s24 = sshll.u32 %s188_s23, 4  ;;  %p136_p8 = scmp.ne.s32.totalorder %s242_s1, %s135_s27  ;;  %s28_s24 = int_to_ptr.vmem [resolvable:$true] %s27_s24 }
  0x15   :  { %p139_p9 = scmp.lt.u32.totalorder %s135_s27, %s242_s1 }
  0x17   :  { %p141_p10 = pnand %p139_p9, %p136_p8 }
  0x19   :  { %144 = shalt.err (!%p141_p10)
}
  0x1a   :  { %s145_s4 = scalar_lea.vmem %s28_s24, 256  ;;  %p150_p12 = scmp.lt.s32.totalorder %s28_s24, %s28_s24 }
  0x1b   :  { %p146_p11 = scmp.ne.s32.totalorder %s28_s24, %s145_s4  ;;  %p151_p13 = scmp.lt.s32.totalorder %s145_s4, %s145_s4 }
  0x1d   :  { %p152_p0 = por %p151_p13, %p150_p12 }
  0x1f   :  { %p153_p1 = pnand %p152_p0, %p146_p11 }
  0x21   :  { %156 = shalt.err (!%p153_p1)
}
  0x22   :  { %33 = dma.hbm_to_vmem [thread:$0]  %s242_s1, 256, %s28_s24, [#allocation7], %s186_s19, %s186_s19, %s187_s20  }
  0x23   :  { %179 = dma.done.wait [#allocation4], 256  }
  0x24   :  { %180 = vsyncadd [#allocation4], 4294967040 }
  0x25   :  { %181 = dma.done.wait [#allocation7], 256  }
  0x26   :  { %182 = vsyncadd [#allocation7], 4294967040  ;;  %v45_v0 = vld [vmem:[#allocation3] sm:$0xff]  ;;  %v46_v1 = vld [vmem:[#allocation3 + $0x8] sm:$0xff]  ;;  %s189_s1 = smov [#allocation8]   ;;  %vm84_vm0 = vcmask 0  }
  0x27   :  { %v47_v2 = vld [vmem:[#allocation6] sm:$0xff]  ;;  %v48_v3 = vld [vmem:[#allocation6 + $0x8] sm:$0xff]  ;;  %v53_v4 = vand.u32 2147483647, %v45_v0  ;;  %v54_v5 = vand.u32 2147483647, %v46_v1 }
  0x28   :  { %v57_v6 = vand.u32 2147483647, %v47_v2  ;;  %v58_v7 = vand.u32 2147483647, %v48_v3  ;;  %v49_v12 = vsub.f32 %v45_v0, %v47_v2  ;;  %v50_v13 = vsub.f32 %v46_v1, %v48_v3  ;;  %s92_s6 = sshll.u32 %s189_s1, 4  ;;  %s93_s6 = int_to_ptr.vmem [resolvable:$true] %s92_s6 }
  0x29   :  { %v55_v8 = vadd.f32 0.01, %v53_v4  ;;  %v56_v9 = vadd.f32 0.01, %v54_v5  ;;  %s157_s8 = scalar_lea.vmem %s93_s6, 16  ;;  %s161_s9 = scalar_lea.vmem %s93_s6, 32 }
  0x2a   :  { %v51_v14 = vand.u32 2147483647, %v49_v12  ;;  %v52_v15 = vand.u32 2147483647, %v50_v13  ;;  %p158_p2 = scmp.ne.s32.totalorder %s93_s6, %s157_s8  ;;  %p162_p3 = scmp.lt.s32.totalorder %s93_s6, %s93_s6 }
  0x2b   :  { %v59_v10 = vadd.f32 %v57_v6, %v55_v8  ;;  %v60_v11 = vadd.f32 %v58_v7, %v56_v9  ;;  %p163_p4 = scmp.lt.s32.totalorder %s161_s9, %s157_s8 }
  0x2d   :  { %109 = vrcp.f32 %v59_v10  ;;  %p164_p5 = por %p163_p4, %p162_p3 }
  0x2e   :  { %111 = vrcp.f32 %v60_v11 }
  0x2f   :  { %p165_p6 = pnand %p164_p5, %p158_p2 }
  0x37   :  { %v110_v16 = vpop.eup %109 }
  0x38   :  { %v112_v17 = vpop.eup %111  ;;  %v62_v18 = vmul.f32 %v110_v16, %v51_v14 }
  0x39   :  { %v64_v19 = vmul.f32 %v112_v17, %v52_v15 }
  0x3b   :  { %v66_v20 = vadd.f32 %v64_v19, %v62_v18 }
  0x3d   :  { %73 = vadd.xlane.f32.xlu0 %v66_v20 }
  0xca   :  { %v74_v21 = vpop.xlane.xlu0 %73 }
  0xcb   :  { %v75_v22 = vrot.slane %v74_v21, 4 }
  0xcd   :  { %v76_v23 = vadd.f32 %v75_v22, %v74_v21 }
  0xcf   :  { %v77_v24 = vrot.slane %v76_v23, 2 }
  0xd1   :  { %v78_v25 = vadd.f32 %v77_v24, %v76_v23 }
  0xd3   :  { %v79_v26 = vrot.slane %v78_v25, 1 }
  0xd5   :  { %v80_v27 = vadd.f32 %v79_v26, %v78_v25 }
  0xd7   :  { %102 = vpush %v80_v27 }
 0x108   :  { %s103_s7 = spop %102 }
 0x109   :  { %v82_v28 = vstv %s103_s7 }
 0x10a   :  { %v83_v29 = vmul.f32 0.00048828125, %v82_v28 }
 0x10c   :  { %85 = vst.msk [vmem:[#allocation8] sm:$0x1] %vm84_vm0, %v83_v29 }
 0x10d   :  { %168 = shalt.err (!%p165_p6)
}
 0x10e   :  { %s169_s12 = scalar_lea.hbm %s243_s2, 16 }
 0x10f   :  { %p170_p7 = scmp.ne.s32.totalorder %s243_s2, %s169_s12  ;;  %p173_p8 = scmp.lt.u32.totalorder %s169_s12, %s243_s2 }
 0x111   :  { %p175_p9 = pnand %p173_p8, %p170_p7 }
 0x113   :  { %178 = shalt.err (!%p175_p9)
}
 0x114   :  { %95 = dma.vmem_to_hbm [thread:$0]  %s93_s6, 16, %s243_s2, [#allocation5]  }
 0x115   :  { %183 = dma.done.wait [#allocation5], 16  }
 0x116   :  { %184 = vsyncadd [#allocation5], 4294967280 }
 0x117   :  { %99 = vsyncpa [#allocation4], 1 }
 0x118   :  { %100 = vsyncpa [#allocation7], 1 }
 0x119   :  { %101 = vsyncpa [#allocation5], 1 }

</bundles_post_ra>
